<compile_context>
chip_gen: v7x
topology: tpu7x:2x2x1
jax: 0.10.0
libtpu: 0.0.40
codegen_flags: <defaults>
</compile_context>

<pallas_src>
import jax
import jax.numpy as jnp
from jax.experimental import pallas as pl
from jax.experimental.pallas import tpu as pltpu

# ---------------------------------------------------------------------------
# Problem sizes (small, consistent with the module's constructor)
# ---------------------------------------------------------------------------
N          = 8     # number of samples (rows)
IN_DIM     = 32
HIDDEN_DIM = 32
BATCH_DIM  = 4     # dimensionality of the `batch` covariate input
Z_DIM      = 16
DROP       = 0.1   # unused (dropout == identity)

BN_EPS     = 1e-5
LRELU_SLP  = 0.01

PAD   = 32         # common padded fan-in / fan-out width for packed weights
OUT_W = 128        # lane-dense packed output width (unmasked vst)

# Layer dimension tables (fan_in, fan_out) for every nn.Linear, in order.
ENC_DIMS = [(IN_DIM, HIDDEN_DIM)] + [(HIDDEN_DIM, HIDDEN_DIM)] * 3 + [(HIDDEN_DIM, Z_DIM)]
DEC_DIMS = [(Z_DIM, HIDDEN_DIM)] + [(HIDDEN_DIM, HIDDEN_DIM)] * 3 + [(HIDDEN_DIM, IN_DIM)]
MAP_DIMS = [(BATCH_DIM, HIDDEN_DIM), (HIDDEN_DIM, Z_DIM)]
ALL_DIMS = ENC_DIMS + DEC_DIMS + MAP_DIMS
N_LAYERS = len(ALL_DIMS)                 # 12 Linear layers

ENC_LAYERS = list(range(0, 5))           # weight slab indices
DEC_LAYERS = list(range(5, 10))
MAP_LAYERS = [10, 11]
ENC_BNS = [0, 1, 2, 3]                   # BatchNorm indices
DEC_BNS = [4, 5, 6, 7]
MAP_BNS = [8]
N_BN = 9

# Slab 12 of the packed weight operand holds the per-feature vectors:
#   rows [0, 12)  : biases (one per Linear; kernel only reads 4, 9, 11)
#   rows [12, 21) : BN gammas
#   rows [21, 30) : BN betas
VEC_SLAB = N_LAYERS                       # 12
B_OFF, G_OFF, BT_OFF = 0, N_LAYERS, N_LAYERS + N_BN
N_SLABS = N_LAYERS + 1                    # 13


# ---------------------------------------------------------------------------
# Kernel
# ---------------------------------------------------------------------------
def ae_kernel(xb_ref, w_ref, out_ref):
    # xb_ref:  (2, N, PAD)          slab 0 = x, slab 1 = zero-padded batch
    # w_ref:   (N_SLABS, PAD, PAD)  12 Linear weights + 1 vector slab
    # out_ref: (N, OUT_W)           [hidden | rec_x | zeros] packed output

    vecs = w_ref[VEC_SLAB]                # (PAD, PAD) bias/gamma/beta rows

    def row(r):
        return vecs[r:r + 1, :]           # (1, PAD), static slice

    def block(h, layer_ids, bn_ids):
        # n x [Linear, BN, LeakyReLU, (Dropout = identity)] + final Linear.
        for li, bi in zip(layer_ids[:-1], bn_ids):
            # Linear WITHOUT bias: bias is exactly cancelled by the following
            # training-mode BatchNorm's mean subtraction.
            h = jnp.dot(h, w_ref[li], preferred_element_type=jnp.float32)
            # One-pass batch stats: var = E[h^2] - mean^2 (biased), fused into
            # a single scale/shift; LeakyReLU(0.01) as one maximum.
            m1 = jnp.mean(h, axis=0, keepdims=True)
            m2 = jnp.mean(h * h, axis=0, keepdims=True)
            scale = row(G_OFF + bi) * jax.lax.rsqrt(m2 - m1 * m1 + BN_EPS)
            h = h * scale + (row(BT_OFF + bi) - m1 * scale)
            h = jnp.maximum(h, LRELU_SLP * h)
            # TODO(synk): nn.Dropout omitted (identity / eval behaviour).
        li = layer_ids[-1]
        return (jnp.dot(h, w_ref[li], preferred_element_type=jnp.float32)
                + row(B_OFF + li))

    x  = xb_ref[0]                         # (N, PAD)
    bt = xb_ref[1]                         # (N, PAD), lanes >= BATCH_DIM are 0

    hidden = block(x, ENC_LAYERS, ENC_BNS)            # lanes >= Z_DIM are 0
    be     = block(bt, MAP_LAYERS, MAP_BNS)           # lanes >= Z_DIM are 0
    rec_x  = block(hidden + be, DEC_LAYERS, DEC_BNS)  # (N, PAD)

    # Single lane-dense (N, 128) slab -> one unmasked store, one output DMA.
    zpad = jnp.zeros((hidden.shape[0], OUT_W - 2 * PAD), jnp.float32)
    out_ref[...] = jnp.concatenate([hidden, rec_x, zpad], axis=-1)


# ---------------------------------------------------------------------------
# Packed parameter construction (deterministic, PyTorch-style Linear init)
# ---------------------------------------------------------------------------
def make_packed_params(key):
    """Returns W: (N_SLABS, PAD, PAD) f32.
       Slabs [0,12): zero-padded Linear weights (in, out).
       Slab 12     : biases (rows 0-11), BN gammas (12-20), BN betas (21-29).
    """
    keys = jax.random.split(key, N_LAYERS)
    W = jnp.zeros((N_SLABS, PAD, PAD), jnp.float32)
    for i, ((fi, fo), k) in enumerate(zip(ALL_DIMS, keys)):
        kw, kb = jax.random.split(k)
        bound = 1.0 / (fi ** 0.5)
        w = jax.random.uniform(kw, (fi, fo), jnp.float32, -bound, bound)
        b = jax.random.uniform(kb, (fo,), jnp.float32, -bound, bound)
        W = W.at[i, :fi, :fo].set(w)
        W = W.at[VEC_SLAB, B_OFF + i, :fo].set(b)
    # BatchNorm affine init: gamma = 1, beta = 0 (all BN layers are PAD-wide).
    W = W.at[VEC_SLAB, G_OFF:G_OFF + N_BN, :].set(1.0)
    return W


# ---------------------------------------------------------------------------
# Pure-JAX reference (unpadded math, all biases, two-pass variance)
# ---------------------------------------------------------------------------
def ae_reference(x, batch, W):
    vec = W[VEC_SLAB]

    def linear(h, li, fi, fo):
        return h @ W[li, :fi, :fo] + vec[B_OFF + li, :fo]

    def bn_lrelu(h, bi):
        mean = h.mean(0, keepdims=True)
        var = ((h - mean) ** 2).mean(0, keepdims=True)
        scale = vec[G_OFF + bi] * jax.lax.rsqrt(var + BN_EPS)
        h = h * scale + (vec[BT_OFF + bi] - mean * scale)
        return jnp.maximum(h, LRELU_SLP * h)

    def block(h, layer_ids, bn_ids, dims):
        for (li, (fi, fo)), bi in zip(list(zip(layer_ids, dims))[:-1], bn_ids):
            h = bn_lrelu(linear(h, li, fi, fo), bi)
        li, (fi, fo) = layer_ids[-1], dims[-1]
        return linear(h, li, fi, fo)

    hidden = block(x, ENC_LAYERS, ENC_BNS, ENC_DIMS)
    be = block(batch, MAP_LAYERS, MAP_BNS, MAP_DIMS)
    rec_x = block(hidden + be, DEC_LAYERS, DEC_BNS, DEC_DIMS)
    return hidden, rec_x


# ---------------------------------------------------------------------------
# Wrapper
# ---------------------------------------------------------------------------
@jax.jit
def ae_forward(x, batch, W):
    n = x.shape[0]
    # Pack x and the zero-padded batch covariate into ONE operand: one input
    # DMA instead of two, and no standalone pad op in the wrapper.
    xb = jnp.zeros((2, n, PAD), jnp.float32)
    xb = xb.at[0, :, :IN_DIM].set(x)
    xb = xb.at[1, :, :BATCH_DIM].set(batch)

    vmem = pl.BlockSpec(memory_space=pltpu.MemorySpace.VMEM)

    matmul_flops = 2 * n * sum(fi * fo for fi, fo in ALL_DIMS)
    bytes_accessed = (xb.size + W.size + n * OUT_W) * 4
    cost = pl.CostEstimate(
        flops=matmul_flops,
        transcendentals=N_BN * PAD,           # one rsqrt per BN feature
        bytes_accessed=bytes_accessed,
    )

    out = pl.pallas_call(
        ae_kernel,
        out_shape=jax.ShapeDtypeStruct((n, OUT_W), jnp.float32),
        in_specs=[vmem, vmem],
        out_specs=vmem,
        compiler_params=pltpu.CompilerParams(vmem_limit_bytes=8 * 1024 * 1024),
        cost_estimate=cost,
    )(xb, W)

    hidden = out[:, :Z_DIM]
    rec_x = out[:, PAD:PAD + IN_DIM]
    return hidden, rec_x


# ---------------------------------------------------------------------------
# Main
# ---------------------------------------------------------------------------
if __name__ == "__main__":
    key = jax.random.PRNGKey(0)
    k_x, k_b, k_p = jax.random.split(key, 3)

    x = jax.random.normal(k_x, (N, IN_DIM), jnp.float32)
    # one-hot-ish batch covariate, as typical for this kind of AE
    batch_ids = jax.random.randint(k_b, (N,), 0, BATCH_DIM)
    batch = jax.nn.one_hot(batch_ids, BATCH_DIM, dtype=jnp.float32)

    W = make_packed_params(k_p)

    hidden, rec_x = ae_forward(x, batch, W)
    jax.block_until_ready((hidden, rec_x))

    assert hidden.shape == (N, Z_DIM) and rec_x.shape == (N, IN_DIM)
    assert bool(jnp.all(jnp.isfinite(hidden))) and bool(jnp.all(jnp.isfinite(rec_x)))

    # Correctness check vs. a pure-JAX (unpadded, full-bias, two-pass-var)
    # reference; kernel's bias-skip / one-pass variance are mathematically
    # equivalent, tolerance covers the tiny float reordering.
    hid_ref, rec_ref = ae_reference(x, batch, W)
    assert bool(jnp.allclose(hidden, hid_ref, rtol=2e-4, atol=2e-4)), "hidden mismatch"
    assert bool(jnp.allclose(rec_x, rec_ref, rtol=2e-4, atol=2e-4)), "rec_x mismatch"

    print("KERNEL_OK")
</pallas_src>

<mosaic_0001>
module attributes {stable_mosaic.version = 11 : i64} {
  func.func @ae_kernel(%arg0: memref<2x8x32xf32, #tpu.memory_space<vmem>>, %arg1: memref<13x32x32xf32, #tpu.memory_space<vmem>>, %arg2: memref<8x128xf32, #tpu.memory_space<vmem>>) attributes {dimension_semantics = [], scalar_prefetch = 0 : i64, scratch_operands = 0 : i64, tpu.core_type = #tpu.core_type<tc>} {
    %c12 = arith.constant 12 : index
    %c0 = arith.constant 0 : index
    %c0_0 = arith.constant 0 : index
    %0 = vector.load %arg1[%c12, %c0, %c0_0] : memref<13x32x32xf32, #tpu.memory_space<vmem>>, vector<1x32x32xf32>
    %1 = vector.shape_cast %0 : vector<1x32x32xf32> to vector<32x32xf32>
    %c0_1 = arith.constant 0 : index
    %c0_2 = arith.constant 0 : index
    %c0_3 = arith.constant 0 : index
    %2 = vector.load %arg0[%c0_1, %c0_2, %c0_3] : memref<2x8x32xf32, #tpu.memory_space<vmem>>, vector<1x8x32xf32>
    %3 = vector.shape_cast %2 : vector<1x8x32xf32> to vector<8x32xf32>
    %c1 = arith.constant 1 : index
    %c0_4 = arith.constant 0 : index
    %c0_5 = arith.constant 0 : index
    %4 = vector.load %arg0[%c1, %c0_4, %c0_5] : memref<2x8x32xf32, #tpu.memory_space<vmem>>, vector<1x8x32xf32>
    %5 = vector.shape_cast %4 : vector<1x8x32xf32> to vector<8x32xf32>
    %c0_6 = arith.constant 0 : index
    %c0_7 = arith.constant 0 : index
    %c0_8 = arith.constant 0 : index
    %6 = vector.load %arg1[%c0_6, %c0_7, %c0_8] : memref<13x32x32xf32, #tpu.memory_space<vmem>>, vector<1x32x32xf32>
    %7 = vector.shape_cast %6 : vector<1x32x32xf32> to vector<32x32xf32>
    %cst = arith.constant dense<0.000000e+00> : vector<8x32xf32>
    %8 = tpu.matmul %3, %7, %cst {dimension_numbers = #tpu.dot_dimension_numbers<[1], [0], [0], [1], [0, 0, 1, 1], [], []>} : vector<8x32xf32>, vector<32x32xf32>, vector<8x32xf32> -> vector<8x32xf32>
    %cst_9 = arith.constant dense<0.000000e+00> : vector<32xf32>
    %9 = vector.multi_reduction <add>, %8, %cst_9 [0] : vector<8x32xf32> to vector<32xf32>
    %10 = vector.shape_cast %9 : vector<32xf32> to vector<1x32xf32>
    %cst_10 = arith.constant 8.000000e+00 : f32
    %11 = vector.broadcast %cst_10 : f32 to vector<1x32xf32>
    %12 = arith.divf %10, %11 : vector<1x32xf32>
    %13 = arith.mulf %8, %8 : vector<8x32xf32>
    %cst_11 = arith.constant dense<0.000000e+00> : vector<32xf32>
    %14 = vector.multi_reduction <add>, %13, %cst_11 [0] : vector<8x32xf32> to vector<32xf32>
    %15 = vector.shape_cast %14 : vector<32xf32> to vector<1x32xf32>
    %cst_12 = arith.constant 8.000000e+00 : f32
    %16 = vector.broadcast %cst_12 : f32 to vector<1x32xf32>
    %17 = arith.divf %15, %16 : vector<1x32xf32>
    %18 = vector.extract_strided_slice %1 {offsets = [12, 0], sizes = [1, 32], strides = [1, 1]} : vector<32x32xf32> to vector<1x32xf32>
    %19 = arith.mulf %12, %12 : vector<1x32xf32>
    %20 = arith.subf %17, %19 : vector<1x32xf32>
    %cst_13 = arith.constant 9.99999974E-6 : f32
    %21 = vector.broadcast %cst_13 : f32 to vector<1x32xf32>
    %22 = arith.addf %20, %21 : vector<1x32xf32>
    %23 = math.rsqrt %22 : vector<1x32xf32>
    %24 = arith.mulf %18, %23 : vector<1x32xf32>
    %25 = vector.broadcast %24 : vector<1x32xf32> to vector<8x32xf32>
    %26 = arith.mulf %8, %25 : vector<8x32xf32>
    %27 = vector.extract_strided_slice %1 {offsets = [21, 0], sizes = [1, 32], strides = [1, 1]} : vector<32x32xf32> to vector<1x32xf32>
    %28 = arith.mulf %12, %24 : vector<1x32xf32>
    %29 = arith.subf %27, %28 : vector<1x32xf32>
    %30 = vector.broadcast %29 : vector<1x32xf32> to vector<8x32xf32>
    %31 = arith.addf %26, %30 : vector<8x32xf32>
    %cst_14 = arith.constant 0.00999999977 : f32
    %32 = vector.broadcast %cst_14 : f32 to vector<8x32xf32>
    %33 = arith.mulf %32, %31 : vector<8x32xf32>
    %34 = arith.maximumf %31, %33 : vector<8x32xf32>
    %c1_15 = arith.constant 1 : index
    %c0_16 = arith.constant 0 : index
    %c0_17 = arith.constant 0 : index
    %35 = vector.load %arg1[%c1_15, %c0_16, %c0_17] : memref<13x32x32xf32, #tpu.memory_space<vmem>>, vector<1x32x32xf32>
    %36 = vector.shape_cast %35 : vector<1x32x32xf32> to vector<32x32xf32>
    %cst_18 = arith.constant dense<0.000000e+00> : vector<8x32xf32>
    %37 = tpu.matmul %34, %36, %cst_18 {dimension_numbers = #tpu.dot_dimension_numbers<[1], [0], [0], [1], [0, 0, 1, 1], [], []>} : vector<8x32xf32>, vector<32x32xf32>, vector<8x32xf32> -> vector<8x32xf32>
    %cst_19 = arith.constant dense<0.000000e+00> : vector<32xf32>
    %38 = vector.multi_reduction <add>, %37, %cst_19 [0] : vector<8x32xf32> to vector<32xf32>
    %39 = vector.shape_cast %38 : vector<32xf32> to vector<1x32xf32>
    %cst_20 = arith.constant 8.000000e+00 : f32
    %40 = vector.broadcast %cst_20 : f32 to vector<1x32xf32>
    %41 = arith.divf %39, %40 : vector<1x32xf32>
    %42 = arith.mulf %37, %37 : vector<8x32xf32>
    %cst_21 = arith.constant dense<0.000000e+00> : vector<32xf32>
    %43 = vector.multi_reduction <add>, %42, %cst_21 [0] : vector<8x32xf32> to vector<32xf32>
    %44 = vector.shape_cast %43 : vector<32xf32> to vector<1x32xf32>
    %cst_22 = arith.constant 8.000000e+00 : f32
    %45 = vector.broadcast %cst_22 : f32 to vector<1x32xf32>
    %46 = arith.divf %44, %45 : vector<1x32xf32>
    %47 = vector.extract_strided_slice %1 {offsets = [13, 0], sizes = [1, 32], strides = [1, 1]} : vector<32x32xf32> to vector<1x32xf32>
    %48 = arith.mulf %41, %41 : vector<1x32xf32>
    %49 = arith.subf %46, %48 : vector<1x32xf32>
    %cst_23 = arith.constant 9.99999974E-6 : f32
    %50 = vector.broadcast %cst_23 : f32 to vector<1x32xf32>
    %51 = arith.addf %49, %50 : vector<1x32xf32>
    %52 = math.rsqrt %51 : vector<1x32xf32>
    %53 = arith.mulf %47, %52 : vector<1x32xf32>
    %54 = vector.broadcast %53 : vector<1x32xf32> to vector<8x32xf32>
    %55 = arith.mulf %37, %54 : vector<8x32xf32>
    %56 = vector.extract_strided_slice %1 {offsets = [22, 0], sizes = [1, 32], strides = [1, 1]} : vector<32x32xf32> to vector<1x32xf32>
    %57 = arith.mulf %41, %53 : vector<1x32xf32>
    %58 = arith.subf %56, %57 : vector<1x32xf32>
    %59 = vector.broadcast %58 : vector<1x32xf32> to vector<8x32xf32>
    %60 = arith.addf %55, %59 : vector<8x32xf32>
    %cst_24 = arith.constant 0.00999999977 : f32
    %61 = vector.broadcast %cst_24 : f32 to vector<8x32xf32>
    %62 = arith.mulf %61, %60 : vector<8x32xf32>
    %63 = arith.maximumf %60, %62 : vector<8x32xf32>
    %c2 = arith.constant 2 : index
    %c0_25 = arith.constant 0 : index
    %c0_26 = arith.constant 0 : index
    %64 = vector.load %arg1[%c2, %c0_25, %c0_26] : memref<13x32x32xf32, #tpu.memory_space<vmem>>, vector<1x32x32xf32>
    %65 = vector.shape_cast %64 : vector<1x32x32xf32> to vector<32x32xf32>
    %cst_27 = arith.constant dense<0.000000e+00> : vector<8x32xf32>
    %66 = tpu.matmul %63, %65, %cst_27 {dimension_numbers = #tpu.dot_dimension_numbers<[1], [0], [0], [1], [0, 0, 1, 1], [], []>} : vector<8x32xf32>, vector<32x32xf32>, vector<8x32xf32> -> vector<8x32xf32>
    %cst_28 = arith.constant dense<0.000000e+00> : vector<32xf32>
    %67 = vector.multi_reduction <add>, %66, %cst_28 [0] : vector<8x32xf32> to vector<32xf32>
    %68 = vector.shape_cast %67 : vector<32xf32> to vector<1x32xf32>
    %cst_29 = arith.constant 8.000000e+00 : f32
    %69 = vector.broadcast %cst_29 : f32 to vector<1x32xf32>
    %70 = arith.divf %68, %69 : vector<1x32xf32>
    %71 = arith.mulf %66, %66 : vector<8x32xf32>
    %cst_30 = arith.constant dense<0.000000e+00> : vector<32xf32>
    %72 = vector.multi_reduction <add>, %71, %cst_30 [0] : vector<8x32xf32> to vector<32xf32>
    %73 = vector.shape_cast %72 : vector<32xf32> to vector<1x32xf32>
    %cst_31 = arith.constant 8.000000e+00 : f32
    %74 = vector.broadcast %cst_31 : f32 to vector<1x32xf32>
    %75 = arith.divf %73, %74 : vector<1x32xf32>
    %76 = vector.extract_strided_slice %1 {offsets = [14, 0], sizes = [1, 32], strides = [1, 1]} : vector<32x32xf32> to vector<1x32xf32>
    %77 = arith.mulf %70, %70 : vector<1x32xf32>
    %78 = arith.subf %75, %77 : vector<1x32xf32>
    %cst_32 = arith.constant 9.99999974E-6 : f32
    %79 = vector.broadcast %cst_32 : f32 to vector<1x32xf32>
    %80 = arith.addf %78, %79 : vector<1x32xf32>
    %81 = math.rsqrt %80 : vector<1x32xf32>
    %82 = arith.mulf %76, %81 : vector<1x32xf32>
    %83 = vector.broadcast %82 : vector<1x32xf32> to vector<8x32xf32>
    %84 = arith.mulf %66, %83 : vector<8x32xf32>
    %85 = vector.extract_strided_slice %1 {offsets = [23, 0], sizes = [1, 32], strides = [1, 1]} : vector<32x32xf32> to vector<1x32xf32>
    %86 = arith.mulf %70, %82 : vector<1x32xf32>
    %87 = arith.subf %85, %86 : vector<1x32xf32>
    %88 = vector.broadcast %87 : vector<1x32xf32> to vector<8x32xf32>
    %89 = arith.addf %84, %88 : vector<8x32xf32>
    %cst_33 = arith.constant 0.00999999977 : f32
    %90 = vector.broadcast %cst_33 : f32 to vector<8x32xf32>
    %91 = arith.mulf %90, %89 : vector<8x32xf32>
    %92 = arith.maximumf %89, %91 : vector<8x32xf32>
    %c3 = arith.constant 3 : index
    %c0_34 = arith.constant 0 : index
    %c0_35 = arith.constant 0 : index
    %93 = vector.load %arg1[%c3, %c0_34, %c0_35] : memref<13x32x32xf32, #tpu.memory_space<vmem>>, vector<1x32x32xf32>
    %94 = vector.shape_cast %93 : vector<1x32x32xf32> to vector<32x32xf32>
    %cst_36 = arith.constant dense<0.000000e+00> : vector<8x32xf32>
    %95 = tpu.matmul %92, %94, %cst_36 {dimension_numbers = #tpu.dot_dimension_numbers<[1], [0], [0], [1], [0, 0, 1, 1], [], []>} : vector<8x32xf32>, vector<32x32xf32>, vector<8x32xf32> -> vector<8x32xf32>
    %cst_37 = arith.constant dense<0.000000e+00> : vector<32xf32>
    %96 = vector.multi_reduction <add>, %95, %cst_37 [0] : vector<8x32xf32> to vector<32xf32>
    %97 = vector.shape_cast %96 : vector<32xf32> to vector<1x32xf32>
    %cst_38 = arith.constant 8.000000e+00 : f32
    %98 = vector.broadcast %cst_38 : f32 to vector<1x32xf32>
    %99 = arith.divf %97, %98 : vector<1x32xf32>
    %100 = arith.mulf %95, %95 : vector<8x32xf32>
    %cst_39 = arith.constant dense<0.000000e+00> : vector<32xf32>
    %101 = vector.multi_reduction <add>, %100, %cst_39 [0] : vector<8x32xf32> to vector<32xf32>
    %102 = vector.shape_cast %101 : vector<32xf32> to vector<1x32xf32>
    %cst_40 = arith.constant 8.000000e+00 : f32
    %103 = vector.broadcast %cst_40 : f32 to vector<1x32xf32>
    %104 = arith.divf %102, %103 : vector<1x32xf32>
    %105 = vector.extract_strided_slice %1 {offsets = [15, 0], sizes = [1, 32], strides = [1, 1]} : vector<32x32xf32> to vector<1x32xf32>
    %106 = arith.mulf %99, %99 : vector<1x32xf32>
    %107 = arith.subf %104, %106 : vector<1x32xf32>
    %cst_41 = arith.constant 9.99999974E-6 : f32
    %108 = vector.broadcast %cst_41 : f32 to vector<1x32xf32>
    %109 = arith.addf %107, %108 : vector<1x32xf32>
    %110 = math.rsqrt %109 : vector<1x32xf32>
    %111 = arith.mulf %105, %110 : vector<1x32xf32>
    %112 = vector.broadcast %111 : vector<1x32xf32> to vector<8x32xf32>
    %113 = arith.mulf %95, %112 : vector<8x32xf32>
    %114 = vector.extract_strided_slice %1 {offsets = [24, 0], sizes = [1, 32], strides = [1, 1]} : vector<32x32xf32> to vector<1x32xf32>
    %115 = arith.mulf %99, %111 : vector<1x32xf32>
    %116 = arith.subf %114, %115 : vector<1x32xf32>
    %117 = vector.broadcast %116 : vector<1x32xf32> to vector<8x32xf32>
    %118 = arith.addf %113, %117 : vector<8x32xf32>
    %cst_42 = arith.constant 0.00999999977 : f32
    %119 = vector.broadcast %cst_42 : f32 to vector<8x32xf32>
    %120 = arith.mulf %119, %118 : vector<8x32xf32>
    %121 = arith.maximumf %118, %120 : vector<8x32xf32>
    %c4 = arith.constant 4 : index
    %c0_43 = arith.constant 0 : index
    %c0_44 = arith.constant 0 : index
    %122 = vector.load %arg1[%c4, %c0_43, %c0_44] : memref<13x32x32xf32, #tpu.memory_space<vmem>>, vector<1x32x32xf32>
    %123 = vector.shape_cast %122 : vector<1x32x32xf32> to vector<32x32xf32>
    %cst_45 = arith.constant dense<0.000000e+00> : vector<8x32xf32>
    %124 = tpu.matmul %121, %123, %cst_45 {dimension_numbers = #tpu.dot_dimension_numbers<[1], [0], [0], [1], [0, 0, 1, 1], [], []>} : vector<8x32xf32>, vector<32x32xf32>, vector<8x32xf32> -> vector<8x32xf32>
    %125 = vector.extract_strided_slice %1 {offsets = [4, 0], sizes = [1, 32], strides = [1, 1]} : vector<32x32xf32> to vector<1x32xf32>
    %126 = vector.broadcast %125 : vector<1x32xf32> to vector<8x32xf32>
    %127 = arith.addf %124, %126 : vector<8x32xf32>
    %c10 = arith.constant 10 : index
    %c0_46 = arith.constant 0 : index
    %c0_47 = arith.constant 0 : index
    %128 = vector.load %arg1[%c10, %c0_46, %c0_47] : memref<13x32x32xf32, #tpu.memory_space<vmem>>, vector<1x32x32xf32>
    %129 = vector.shape_cast %128 : vector<1x32x32xf32> to vector<32x32xf32>
    %cst_48 = arith.constant dense<0.000000e+00> : vector<8x32xf32>
    %130 = tpu.matmul %5, %129, %cst_48 {dimension_numbers = #tpu.dot_dimension_numbers<[1], [0], [0], [1], [0, 0, 1, 1], [], []>} : vector<8x32xf32>, vector<32x32xf32>, vector<8x32xf32> -> vector<8x32xf32>
    %cst_49 = arith.constant dense<0.000000e+00> : vector<32xf32>
    %131 = vector.multi_reduction <add>, %130, %cst_49 [0] : vector<8x32xf32> to vector<32xf32>
    %132 = vector.shape_cast %131 : vector<32xf32> to vector<1x32xf32>
    %cst_50 = arith.constant 8.000000e+00 : f32
    %133 = vector.broadcast %cst_50 : f32 to vector<1x32xf32>
    %134 = arith.divf %132, %133 : vector<1x32xf32>
    %135 = arith.mulf %130, %130 : vector<8x32xf32>
    %cst_51 = arith.constant dense<0.000000e+00> : vector<32xf32>
    %136 = vector.multi_reduction <add>, %135, %cst_51 [0] : vector<8x32xf32> to vector<32xf32>
    %137 = vector.shape_cast %136 : vector<32xf32> to vector<1x32xf32>
    %cst_52 = arith.constant 8.000000e+00 : f32
    %138 = vector.broadcast %cst_52 : f32 to vector<1x32xf32>
    %139 = arith.divf %137, %138 : vector<1x32xf32>
    %140 = vector.extract_strided_slice %1 {offsets = [20, 0], sizes = [1, 32], strides = [1, 1]} : vector<32x32xf32> to vector<1x32xf32>
    %141 = arith.mulf %134, %134 : vector<1x32xf32>
    %142 = arith.subf %139, %141 : vector<1x32xf32>
    %cst_53 = arith.constant 9.99999974E-6 : f32
    %143 = vector.broadcast %cst_53 : f32 to vector<1x32xf32>
    %144 = arith.addf %142, %143 : vector<1x32xf32>
    %145 = math.rsqrt %144 : vector<1x32xf32>
    %146 = arith.mulf %140, %145 : vector<1x32xf32>
    %147 = vector.broadcast %146 : vector<1x32xf32> to vector<8x32xf32>
    %148 = arith.mulf %130, %147 : vector<8x32xf32>
    %149 = vector.extract_strided_slice %1 {offsets = [29, 0], sizes = [1, 32], strides = [1, 1]} : vector<32x32xf32> to vector<1x32xf32>
    %150 = arith.mulf %134, %146 : vector<1x32xf32>
    %151 = arith.subf %149, %150 : vector<1x32xf32>
    %152 = vector.broadcast %151 : vector<1x32xf32> to vector<8x32xf32>
    %153 = arith.addf %148, %152 : vector<8x32xf32>
    %cst_54 = arith.constant 0.00999999977 : f32
    %154 = vector.broadcast %cst_54 : f32 to vector<8x32xf32>
    %155 = arith.mulf %154, %153 : vector<8x32xf32>
    %156 = arith.maximumf %153, %155 : vector<8x32xf32>
    %c11 = arith.constant 11 : index
    %c0_55 = arith.constant 0 : index
    %c0_56 = arith.constant 0 : index
    %157 = vector.load %arg1[%c11, %c0_55, %c0_56] : memref<13x32x32xf32, #tpu.memory_space<vmem>>, vector<1x32x32xf32>
    %158 = vector.shape_cast %157 : vector<1x32x32xf32> to vector<32x32xf32>
    %cst_57 = arith.constant dense<0.000000e+00> : vector<8x32xf32>
    %159 = tpu.matmul %156, %158, %cst_57 {dimension_numbers = #tpu.dot_dimension_numbers<[1], [0], [0], [1], [0, 0, 1, 1], [], []>} : vector<8x32xf32>, vector<32x32xf32>, vector<8x32xf32> -> vector<8x32xf32>
    %160 = vector.extract_strided_slice %1 {offsets = [11, 0], sizes = [1, 32], strides = [1, 1]} : vector<32x32xf32> to vector<1x32xf32>
    %161 = vector.broadcast %160 : vector<1x32xf32> to vector<8x32xf32>
    %162 = arith.addf %159, %161 : vector<8x32xf32>
    %163 = arith.addf %127, %162 : vector<8x32xf32>
    %c5 = arith.constant 5 : index
    %c0_58 = arith.constant 0 : index
    %c0_59 = arith.constant 0 : index
    %164 = vector.load %arg1[%c5, %c0_58, %c0_59] : memref<13x32x32xf32, #tpu.memory_space<vmem>>, vector<1x32x32xf32>
    %165 = vector.shape_cast %164 : vector<1x32x32xf32> to vector<32x32xf32>
    %cst_60 = arith.constant dense<0.000000e+00> : vector<8x32xf32>
    %166 = tpu.matmul %163, %165, %cst_60 {dimension_numbers = #tpu.dot_dimension_numbers<[1], [0], [0], [1], [0, 0, 1, 1], [], []>} : vector<8x32xf32>, vector<32x32xf32>, vector<8x32xf32> -> vector<8x32xf32>
    %cst_61 = arith.constant dense<0.000000e+00> : vector<32xf32>
    %167 = vector.multi_reduction <add>, %166, %cst_61 [0] : vector<8x32xf32> to vector<32xf32>
    %168 = vector.shape_cast %167 : vector<32xf32> to vector<1x32xf32>
    %cst_62 = arith.constant 8.000000e+00 : f32
    %169 = vector.broadcast %cst_62 : f32 to vector<1x32xf32>
    %170 = arith.divf %168, %169 : vector<1x32xf32>
    %171 = arith.mulf %166, %166 : vector<8x32xf32>
    %cst_63 = arith.constant dense<0.000000e+00> : vector<32xf32>
    %172 = vector.multi_reduction <add>, %171, %cst_63 [0] : vector<8x32xf32> to vector<32xf32>
    %173 = vector.shape_cast %172 : vector<32xf32> to vector<1x32xf32>
    %cst_64 = arith.constant 8.000000e+00 : f32
    %174 = vector.broadcast %cst_64 : f32 to vector<1x32xf32>
    %175 = arith.divf %173, %174 : vector<1x32xf32>
    %176 = vector.extract_strided_slice %1 {offsets = [16, 0], sizes = [1, 32], strides = [1, 1]} : vector<32x32xf32> to vector<1x32xf32>
    %177 = arith.mulf %170, %170 : vector<1x32xf32>
    %178 = arith.subf %175, %177 : vector<1x32xf32>
    %cst_65 = arith.constant 9.99999974E-6 : f32
    %179 = vector.broadcast %cst_65 : f32 to vector<1x32xf32>
    %180 = arith.addf %178, %179 : vector<1x32xf32>
    %181 = math.rsqrt %180 : vector<1x32xf32>
    %182 = arith.mulf %176, %181 : vector<1x32xf32>
    %183 = vector.broadcast %182 : vector<1x32xf32> to vector<8x32xf32>
    %184 = arith.mulf %166, %183 : vector<8x32xf32>
    %185 = vector.extract_strided_slice %1 {offsets = [25, 0], sizes = [1, 32], strides = [1, 1]} : vector<32x32xf32> to vector<1x32xf32>
    %186 = arith.mulf %170, %182 : vector<1x32xf32>
    %187 = arith.subf %185, %186 : vector<1x32xf32>
    %188 = vector.broadcast %187 : vector<1x32xf32> to vector<8x32xf32>
    %189 = arith.addf %184, %188 : vector<8x32xf32>
    %cst_66 = arith.constant 0.00999999977 : f32
    %190 = vector.broadcast %cst_66 : f32 to vector<8x32xf32>
    %191 = arith.mulf %190, %189 : vector<8x32xf32>
    %192 = arith.maximumf %189, %191 : vector<8x32xf32>
    %c6 = arith.constant 6 : index
    %c0_67 = arith.constant 0 : index
    %c0_68 = arith.constant 0 : index
    %193 = vector.load %arg1[%c6, %c0_67, %c0_68] : memref<13x32x32xf32, #tpu.memory_space<vmem>>, vector<1x32x32xf32>
    %194 = vector.shape_cast %193 : vector<1x32x32xf32> to vector<32x32xf32>
    %cst_69 = arith.constant dense<0.000000e+00> : vector<8x32xf32>
    %195 = tpu.matmul %192, %194, %cst_69 {dimension_numbers = #tpu.dot_dimension_numbers<[1], [0], [0], [1], [0, 0, 1, 1], [], []>} : vector<8x32xf32>, vector<32x32xf32>, vector<8x32xf32> -> vector<8x32xf32>
    %cst_70 = arith.constant dense<0.000000e+00> : vector<32xf32>
    %196 = vector.multi_reduction <add>, %195, %cst_70 [0] : vector<8x32xf32> to vector<32xf32>
    %197 = vector.shape_cast %196 : vector<32xf32> to vector<1x32xf32>
    %cst_71 = arith.constant 8.000000e+00 : f32
    %198 = vector.broadcast %cst_71 : f32 to vector<1x32xf32>
    %199 = arith.divf %197, %198 : vector<1x32xf32>
    %200 = arith.mulf %195, %195 : vector<8x32xf32>
    %cst_72 = arith.constant dense<0.000000e+00> : vector<32xf32>
    %201 = vector.multi_reduction <add>, %200, %cst_72 [0] : vector<8x32xf32> to vector<32xf32>
    %202 = vector.shape_cast %201 : vector<32xf32> to vector<1x32xf32>
    %cst_73 = arith.constant 8.000000e+00 : f32
    %203 = vector.broadcast %cst_73 : f32 to vector<1x32xf32>
    %204 = arith.divf %202, %203 : vector<1x32xf32>
    %205 = vector.extract_strided_slice %1 {offsets = [17, 0], sizes = [1, 32], strides = [1, 1]} : vector<32x32xf32> to vector<1x32xf32>
    %206 = arith.mulf %199, %199 : vector<1x32xf32>
    %207 = arith.subf %204, %206 : vector<1x32xf32>
    %cst_74 = arith.constant 9.99999974E-6 : f32
    %208 = vector.broadcast %cst_74 : f32 to vector<1x32xf32>
    %209 = arith.addf %207, %208 : vector<1x32xf32>
    %210 = math.rsqrt %209 : vector<1x32xf32>
    %211 = arith.mulf %205, %210 : vector<1x32xf32>
    %212 = vector.broadcast %211 : vector<1x32xf32> to vector<8x32xf32>
    %213 = arith.mulf %195, %212 : vector<8x32xf32>
    %214 = vector.extract_strided_slice %1 {offsets = [26, 0], sizes = [1, 32], strides = [1, 1]} : vector<32x32xf32> to vector<1x32xf32>
    %215 = arith.mulf %199, %211 : vector<1x32xf32>
    %216 = arith.subf %214, %215 : vector<1x32xf32>
    %217 = vector.broadcast %216 : vector<1x32xf32> to vector<8x32xf32>
    %218 = arith.addf %213, %217 : vector<8x32xf32>
    %cst_75 = arith.constant 0.00999999977 : f32
    %219 = vector.broadcast %cst_75 : f32 to vector<8x32xf32>
    %220 = arith.mulf %219, %218 : vector<8x32xf32>
    %221 = arith.maximumf %218, %220 : vector<8x32xf32>
    %c7 = arith.constant 7 : index
    %c0_76 = arith.constant 0 : index
    %c0_77 = arith.constant 0 : index
    %222 = vector.load %arg1[%c7, %c0_76, %c0_77] : memref<13x32x32xf32, #tpu.memory_space<vmem>>, vector<1x32x32xf32>
    %223 = vector.shape_cast %222 : vector<1x32x32xf32> to vector<32x32xf32>
    %cst_78 = arith.constant dense<0.000000e+00> : vector<8x32xf32>
    %224 = tpu.matmul %221, %223, %cst_78 {dimension_numbers = #tpu.dot_dimension_numbers<[1], [0], [0], [1], [0, 0, 1, 1], [], []>} : vector<8x32xf32>, vector<32x32xf32>, vector<8x32xf32> -> vector<8x32xf32>
    %cst_79 = arith.constant dense<0.000000e+00> : vector<32xf32>
    %225 = vector.multi_reduction <add>, %224, %cst_79 [0] : vector<8x32xf32> to vector<32xf32>
    %226 = vector.shape_cast %225 : vector<32xf32> to vector<1x32xf32>
    %cst_80 = arith.constant 8.000000e+00 : f32
    %227 = vector.broadcast %cst_80 : f32 to vector<1x32xf32>
    %228 = arith.divf %226, %227 : vector<1x32xf32>
    %229 = arith.mulf %224, %224 : vector<8x32xf32>
    %cst_81 = arith.constant dense<0.000000e+00> : vector<32xf32>
    %230 = vector.multi_reduction <add>, %229, %cst_81 [0] : vector<8x32xf32> to vector<32xf32>
    %231 = vector.shape_cast %230 : vector<32xf32> to vector<1x32xf32>
    %cst_82 = arith.constant 8.000000e+00 : f32
    %232 = vector.broadcast %cst_82 : f32 to vector<1x32xf32>
    %233 = arith.divf %231, %232 : vector<1x32xf32>
    %234 = vector.extract_strided_slice %1 {offsets = [18, 0], sizes = [1, 32], strides = [1, 1]} : vector<32x32xf32> to vector<1x32xf32>
    %235 = arith.mulf %228, %228 : vector<1x32xf32>
    %236 = arith.subf %233, %235 : vector<1x32xf32>
    %cst_83 = arith.constant 9.99999974E-6 : f32
    %237 = vector.broadcast %cst_83 : f32 to vector<1x32xf32>
    %238 = arith.addf %236, %237 : vector<1x32xf32>
    %239 = math.rsqrt %238 : vector<1x32xf32>
    %240 = arith.mulf %234, %239 : vector<1x32xf32>
    %241 = vector.broadcast %240 : vector<1x32xf32> to vector<8x32xf32>
    %242 = arith.mulf %224, %241 : vector<8x32xf32>
    %243 = vector.extract_strided_slice %1 {offsets = [27, 0], sizes = [1, 32], strides = [1, 1]} : vector<32x32xf32> to vector<1x32xf32>
    %244 = arith.mulf %228, %240 : vector<1x32xf32>
    %245 = arith.subf %243, %244 : vector<1x32xf32>
    %246 = vector.broadcast %245 : vector<1x32xf32> to vector<8x32xf32>
    %247 = arith.addf %242, %246 : vector<8x32xf32>
    %cst_84 = arith.constant 0.00999999977 : f32
    %248 = vector.broadcast %cst_84 : f32 to vector<8x32xf32>
    %249 = arith.mulf %248, %247 : vector<8x32xf32>
    %250 = arith.maximumf %247, %249 : vector<8x32xf32>
    %c8 = arith.constant 8 : index
    %c0_85 = arith.constant 0 : index
    %c0_86 = arith.constant 0 : index
    %251 = vector.load %arg1[%c8, %c0_85, %c0_86] : memref<13x32x32xf32, #tpu.memory_space<vmem>>, vector<1x32x32xf32>
    %252 = vector.shape_cast %251 : vector<1x32x32xf32> to vector<32x32xf32>
    %cst_87 = arith.constant dense<0.000000e+00> : vector<8x32xf32>
    %253 = tpu.matmul %250, %252, %cst_87 {dimension_numbers = #tpu.dot_dimension_numbers<[1], [0], [0], [1], [0, 0, 1, 1], [], []>} : vector<8x32xf32>, vector<32x32xf32>, vector<8x32xf32> -> vector<8x32xf32>
    %cst_88 = arith.constant dense<0.000000e+00> : vector<32xf32>
    %254 = vector.multi_reduction <add>, %253, %cst_88 [0] : vector<8x32xf32> to vector<32xf32>
    %255 = vector.shape_cast %254 : vector<32xf32> to vector<1x32xf32>
    %cst_89 = arith.constant 8.000000e+00 : f32
    %256 = vector.broadcast %cst_89 : f32 to vector<1x32xf32>
    %257 = arith.divf %255, %256 : vector<1x32xf32>
    %258 = arith.mulf %253, %253 : vector<8x32xf32>
    %cst_90 = arith.constant dense<0.000000e+00> : vector<32xf32>
    %259 = vector.multi_reduction <add>, %258, %cst_90 [0] : vector<8x32xf32> to vector<32xf32>
    %260 = vector.shape_cast %259 : vector<32xf32> to vector<1x32xf32>
    %cst_91 = arith.constant 8.000000e+00 : f32
    %261 = vector.broadcast %cst_91 : f32 to vector<1x32xf32>
    %262 = arith.divf %260, %261 : vector<1x32xf32>
    %263 = vector.extract_strided_slice %1 {offsets = [19, 0], sizes = [1, 32], strides = [1, 1]} : vector<32x32xf32> to vector<1x32xf32>
    %264 = arith.mulf %257, %257 : vector<1x32xf32>
    %265 = arith.subf %262, %264 : vector<1x32xf32>
    %cst_92 = arith.constant 9.99999974E-6 : f32
    %266 = vector.broadcast %cst_92 : f32 to vector<1x32xf32>
    %267 = arith.addf %265, %266 : vector<1x32xf32>
    %268 = math.rsqrt %267 : vector<1x32xf32>
    %269 = arith.mulf %263, %268 : vector<1x32xf32>
    %270 = vector.broadcast %269 : vector<1x32xf32> to vector<8x32xf32>
    %271 = arith.mulf %253, %270 : vector<8x32xf32>
    %272 = vector.extract_strided_slice %1 {offsets = [28, 0], sizes = [1, 32], strides = [1, 1]} : vector<32x32xf32> to vector<1x32xf32>
    %273 = arith.mulf %257, %269 : vector<1x32xf32>
    %274 = arith.subf %272, %273 : vector<1x32xf32>
    %275 = vector.broadcast %274 : vector<1x32xf32> to vector<8x32xf32>
    %276 = arith.addf %271, %275 : vector<8x32xf32>
    %cst_93 = arith.constant 0.00999999977 : f32
    %277 = vector.broadcast %cst_93 : f32 to vector<8x32xf32>
    %278 = arith.mulf %277, %276 : vector<8x32xf32>
    %279 = arith.maximumf %276, %278 : vector<8x32xf32>
    %c9 = arith.constant 9 : index
    %c0_94 = arith.constant 0 : index
    %c0_95 = arith.constant 0 : index
    %280 = vector.load %arg1[%c9, %c0_94, %c0_95] : memref<13x32x32xf32, #tpu.memory_space<vmem>>, vector<1x32x32xf32>
    %281 = vector.shape_cast %280 : vector<1x32x32xf32> to vector<32x32xf32>
    %cst_96 = arith.constant dense<0.000000e+00> : vector<8x32xf32>
    %282 = tpu.matmul %279, %281, %cst_96 {dimension_numbers = #tpu.dot_dimension_numbers<[1], [0], [0], [1], [0, 0, 1, 1], [], []>} : vector<8x32xf32>, vector<32x32xf32>, vector<8x32xf32> -> vector<8x32xf32>
    %283 = vector.extract_strided_slice %1 {offsets = [9, 0], sizes = [1, 32], strides = [1, 1]} : vector<32x32xf32> to vector<1x32xf32>
    %284 = vector.broadcast %283 : vector<1x32xf32> to vector<8x32xf32>
    %285 = arith.addf %282, %284 : vector<8x32xf32>
    %cst_97 = arith.constant 0.000000e+00 : f32
    %286 = vector.broadcast %cst_97 : f32 to vector<8x64xf32>
    %287 = tpu.concatenate %127, %285, %286 in 1 : vector<8x32xf32>, vector<8x32xf32>, vector<8x64xf32> -> vector<8x128xf32>
    %c0_98 = arith.constant 0 : index
    %c0_99 = arith.constant 0 : index
    %288 = vector.load %arg2[%c0_98, %c0_99] : memref<8x128xf32, #tpu.memory_space<vmem>>, vector<8x128xf32>
    tpu.vector_store %arg2[%c0_98, %c0_99], %287 {strides = array<i32>} : memref<8x128xf32, #tpu.memory_space<vmem>>, vector<8x128xf32>,
    return
  }
}

</mosaic_0001>

<bundles_post_ra>
// kernel: ae_forward.1
= control target key start
LH: loop header
LB: loop body
LE: loop exit
PB: predicated region body
PF: predicated region fallthrough
CT: control target
= control target key end

     0   :  { %7 = vsyncpa [#allocation3], 0  ;;  %s1673_s9 = smov [#allocation2]   ;;  %s1864_s0 = inlined_call_operand.vmem [shape: f32[2,8,32], index: 0, kind: input, shape index: {}]   ;;  %s1865_s1 = inlined_call_operand.hbm [shape: f32[13,32,32], index: 1, kind: input, shape index: {}]   ;;  %s1866_s2 = inlined_call_operand.vmem [shape: f32[8,128], index: 2, kind: output, shape index: {}]  }
   0x1   :  { %s15_s10 = sshll.u32 %s1673_s9, 4  ;;  %s1649_s13 = scalar_lea.hbm %s1865_s1, 6656  ;;  %s16_s10 = int_to_ptr.vmem [resolvable:$true] %s15_s10 }
   0x2   :  { %p1650_p0 = scmp.ne.s32.totalorder %s1865_s1, %s1649_s13  ;;  %p1653_p1 = scmp.lt.u32.totalorder %s1649_s13, %s1865_s1 }
   0x4   :  { %p1655_p2 = pnand %p1653_p1, %p1650_p0 }
   0x6   :  { %1658 = shalt.err (!%p1655_p2)
}
   0x7   :  { %s1659_s18 = scalar_lea.vmem %s16_s10, 6656  ;;  %p1664_p4 = scmp.lt.s32.totalorder %s16_s10, %s16_s10 }
   0x8   :  { %p1660_p3 = scmp.ne.s32.totalorder %s16_s10, %s1659_s18  ;;  %p1665_p5 = scmp.lt.s32.totalorder %s1659_s18, %s1659_s18 }
   0xa   :  { %p1666_p6 = por %p1665_p5, %p1664_p4 }
   0xc   :  { %p1667_p7 = pnand %p1666_p6, %p1660_p3 }
   0xe   :  { %1670 = shalt.err (!%p1667_p7)
}
   0xf   :  { %s1674_s19 = smov 128   ;;  %s1675_s20 = smov 8  }
  0x10   :  { %21 = dma.hbm_to_vmem [thread:$0]  %s1865_s1, 6656, %s16_s10, [#allocation3], %s1674_s19, %s1674_s19, %s1675_s20  }
  0x11   :  { %1671 = dma.done.wait [#allocation3], 6656  }
  0x12   :  { %1672 = vsyncadd [#allocation3], 4294960640  ;;  %v1676_v0 = vmov 0.0|0.0   ;;  %vm1677_vm0 = vmmov 0   ;;  %v1678_v1 = vmov 0.0   ;;  %v33_v2 = vld [vmem:[#allocation2] sm:$0xff]  ;;  %v134_v37 = vlaneseq }
  0x13   :  { %1552 = vmatprep.subr.bf16.mxu0 %v1676_v0  ;;  %1428 = vmatprep.mubr.msk.f32.mxu0 %vm1677_vm0, %v1678_v1  ;;  %v34_v3 = vld [vmem:[#allocation2 + $0x8] sm:$0xff]  ;;  %v35_v4 = vld [vmem:[#allocation2 + $0x10] sm:$0xff]  ;;  %v36_v6 = vld [vmem:[#allocation2 + $0x18] sm:$0xff]  ;;  %vm37_vm1 = vcmask 261120   ;;  %vm1339_vm2 = vcmask 523264  }
  0x14   :  { %1558 = vmatprep.subr.bf16.mxu1 %v1676_v0  ;;  %1439 = vmatprep.mubr.msk.f32.mxu1 %vm1677_vm0, %v1678_v1  ;;  %v1553_v5 = vpack.c.bf16 %v34_v3, %v33_v2  ;;  %v1556_v7 = vpack.c.bf16 %v36_v6, %v35_v4  ;;  %v30_v8 = vld [vmem:[%s1864_s0] sm:$0xff]  ;;  %v153_v10 = vld [vmem:[#allocation2 + $0x28] sm:$0xff]  ;;  %v154_v12 = vld [vmem:[#allocation2 + $0x30] sm:$0xff]  ;;  %v1725_v38 = vshrl.u32 %v134_v37, 7 }
  0x15   :  { %v152_v9 = vld [vmem:[#allocation2 + $0x20] sm:$0xff]  ;;  %v155_v13 = vld [vmem:[#allocation2 + $0x38] sm:$0xff]  ;;  %v1727_v39 = vld [vmem:[#allocation2 + $0x188] sm:$0xff] }
  0x16   :  { %1554 = vmatpush3.bf16.msra.mxu0 %v1553_v5  ;;  %v1559_v11 = vpack.c.bf16 %v153_v10, %v152_v9  ;;  %v1562_v14 = vpack.c.bf16 %v155_v13, %v154_v12  ;;  %v1731_v42 = vsub.s32 4, %v1725_v38  ;;  %v1733_v44 = vld [vmem:[#allocation2 + $0x190] sm:$0xff]  ;;  %v1737_v47 = vsub.s32 5, %v1725_v38  ;;  %v269_v54 = vld [vmem:[#allocation2 + $0x40] sm:$0xff]  ;;  %v270_v55 = vld [vmem:[#allocation2 + $0x48] sm:$0xff] }
  0x17   :  { %1555 = vmatprep.subr.bf16.mxu0 %v1676_v0  ;;  %v1565_v56 = vpack.c.bf16 %v270_v55, %v269_v54  ;;  %v271_v57 = vld [vmem:[#allocation2 + $0x50] sm:$0xff]  ;;  %v272_v58 = vld [vmem:[#allocation2 + $0x58] sm:$0xff] }
  0x18   :  { %1560 = vmatpush3.bf16.msra.mxu1 %v1559_v11  ;;  %v1568_v59 = vpack.c.bf16 %v272_v58, %v271_v57 }
  0x19   :  { %1561 = vmatprep.subr.bf16.mxu1 %v1676_v0 }
  0x1a   :  { %1557 = vmatpush3.bf16.msra.mxu0 %v1556_v7 }
  0x1b   :  { %1564 = vmatprep.subr.bf16.mxu0 %v1676_v0 }
  0x1c   :  { %1563 = vmatpush3.bf16.msra.mxu1 %v1562_v14 }
  0x1d   :  { %1429 = vmatmul.mubr.msk.f32.vlgmr.msra.gmra.mrb[0].mxu0 %vm37_vm1, %v30_v8  ;;  %1570 = vmatprep.subr.bf16.mxu1 %v1676_v0 }
  0x1e   :  { %1450 = vmatprep.mubr.msk.f32.mxu0 %vm1677_vm0, %v1678_v1  ;;  %1566 = vmatpush3.bf16.msra.mxu0 %v1565_v56 }
  0x1f   :  { %1567 = vmatprep.subr.bf16.mxu0 %v1676_v0 }
  0x22   :  { %1569 = vmatpush3.bf16.msra.mxu0 %v1568_v59 }
  0x23   :  { %1576 = vmatprep.subr.bf16.mxu0 %v1676_v0 }
  0xf0   :  { %v107_v15 = vpop.f32.mrb[0].mxu0 }
  0xf1   :  { %v111_v16 = vsel %vm37_vm1, %v107_v15, 0.0  ;;  %v120_v17 = vmul.f32 %v107_v15, %v107_v15  ;;  %v1430_v18 = vpop.f32.mrb[1].mxu0 }
  0xf2   :  { %v112_v19 = vrot.slane %v111_v16, 4 }
  0xf3   :  { %v121_v20 = vsel %vm37_vm1, %v120_v17, 0.0 }
  0xf4   :  { %v113_v21 = vadd.f32 %v112_v19, %v111_v16  ;;  %v122_v22 = vrot.slane %v121_v20, 4 }
  0xf6   :  { %v114_v23 = vrot.slane %v113_v21, 2  ;;  %v123_v24 = vadd.f32 %v122_v22, %v121_v20 }
  0xf8   :  { %v115_v25 = vadd.f32 %v114_v23, %v113_v21  ;;  %v124_v26 = vrot.slane %v123_v24, 2 }
  0xfa   :  { %v116_v27 = vrot.slane %v115_v25, 1  ;;  %v125_v28 = vadd.f32 %v124_v26, %v123_v24 }
  0xfc   :  { %v117_v29 = vadd.f32 %v116_v27, %v115_v25  ;;  %v126_v30 = vrot.slane %v125_v28, 1  ;;  %v263_v25 = vsub.s32 6, %v1725_v38 }
  0xfe   :  { %v119_v31 = vmul.f32 0.125, %v117_v29  ;;  %v127_v32 = vadd.f32 %v126_v30, %v125_v28 }
 0x100   :  { %v128_v33 = vmul.f32 0.125, %v127_v32  ;;  %v129_v34 = vmul.f32 %v119_v31, %v119_v31  ;;  %v386_v32 = vld [vmem:[#allocation2 + $0x60] sm:$0xff] }
 0x102   :  { %v130_v35 = vsub.f32 %v128_v33, %v129_v34  ;;  %v387_v33 = vld [vmem:[#allocation2 + $0x68] sm:$0xff] }
 0x103   :  { %v1571_v34 = vpack.c.bf16 %v387_v33, %v386_v32 }
 0x104   :  { %v131_v36 = vadd.f32 1e-05, %v130_v35  ;;  %v388_v35 = vld [vmem:[#allocation2 + $0x70] sm:$0xff] }
 0x106   :  { %1631 = vrsqrt.f32 %v131_v36  ;;  %v389_v36 = vld [vmem:[#allocation2 + $0x78] sm:$0xff] }
 0x107   :  { %v1574_v37 = vpack.c.bf16 %v389_v36, %v388_v35 }
 0x110   :  { %v1632_v40 = vpop.eup %1631 }
 0x111   :  { %v133_v41 = vmul.f32 %v1632_v40, %v1727_v39 }
 0x113   :  { %v139_v43 = vmul.f32 %v133_v41, %v119_v31  ;;  %v137_v45 = vrot.slane %v133_v41, %v1731_v42 }
 0x115   :  { %v141_v46 = vrot.slane %v139_v43, 7  ;;  %v138_v49 = vmul.f32 %v137_v45, %v107_v15 }
 0x117   :  { %v143_v48 = vsub.f32 %v1733_v44, %v141_v46 }
 0x119   :  { %v147_v50 = vrot.slane %v143_v48, %v1737_v47 }
 0x11b   :  { %v148_v51 = vadd.f32 %v147_v50, %v138_v49 }
 0x11d   :  { %v149_v52 = vmul.f32 0.01, %v148_v51 }
 0x11f   :  { %v150_v53 = vmax.f32 %v148_v51, %v149_v52 }
 0x121   :  { %1440 = vmatmul.mubr.msk.f32.vlgmr.msra.gmra.mrb[0].mxu1 %vm37_vm1, %v150_v53 }
 0x122   :  { %1461 = vmatprep.mubr.msk.f32.mxu1 %vm1677_vm0, %v1678_v1  ;;  %1572 = vmatpush3.bf16.msra.mxu1 %v1571_v34 }
 0x123   :  { %1573 = vmatprep.subr.bf16.mxu1 %v1676_v0 }
 0x126   :  { %1575 = vmatpush3.bf16.msra.mxu1 %v1574_v37 }
 0x127   :  { %1582 = vmatprep.subr.bf16.mxu1 %v1676_v0 }
 0x1f4   :  { %v225_v60 = vpop.f32.mrb[0].mxu1 }
 0x1f5   :  { %v229_v61 = vsel %vm37_vm1, %v225_v60, 0.0  ;;  %v237_v62 = vmul.f32 %v225_v60, %v225_v60  ;;  %v1441_v63 = vpop.f32.mrb[1].mxu1 }
 0x1f6   :  { %v230_v2 = vrot.slane %v229_v61, 4 }
 0x1f7   :  { %v238_v3 = vsel %vm37_vm1, %v237_v62, 0.0 }
 0x1f8   :  { %v231_v4 = vadd.f32 %v230_v2, %v229_v61  ;;  %v239_v5 = vrot.slane %v238_v3, 4 }
 0x1fa   :  { %v232_v6 = vrot.slane %v231_v4, 2  ;;  %v240_v7 = vadd.f32 %v239_v5, %v238_v3 }
 0x1fc   :  { %v233_v8 = vadd.f32 %v232_v6, %v231_v4  ;;  %v241_v9 = vrot.slane %v240_v7, 2 }
 0x1fe   :  { %v234_v10 = vrot.slane %v233_v8, 1  ;;  %v242_v11 = vadd.f32 %v241_v9, %v240_v7 }
 0x200   :  { %v235_v12 = vadd.f32 %v234_v10, %v233_v8  ;;  %v243_v13 = vrot.slane %v242_v11, 1  ;;  %v380_v8 = vsub.s32 7, %v1725_v38 }
 0x202   :  { %v236_v14 = vmul.f32 0.125, %v235_v12  ;;  %v244_v15 = vadd.f32 %v243_v13, %v242_v11  ;;  %v585_v13 = vld [vmem:[#allocation2 + $0x140] sm:$0xff] }
 0x204   :  { %v245_v16 = vmul.f32 0.125, %v244_v15  ;;  %v246_v17 = vmul.f32 %v236_v14, %v236_v14 }
 0x206   :  { %v247_v18 = vsub.f32 %v245_v16, %v246_v17 }
 0x208   :  { %v248_v19 = vadd.f32 1e-05, %v247_v18  ;;  %v587_v18 = vld [vmem:[#allocation2 + $0x150] sm:$0xff] }
 0x20a   :  { %1633 = vrsqrt.f32 %v248_v19  ;;  %v588_v19 = vld [vmem:[#allocation2 + $0x158] sm:$0xff] }
 0x214   :  { %v1634_v20 = vpop.eup %1633 }
 0x215   :  { %v250_v21 = vmul.f32 %v1634_v20, %v1727_v39  ;;  %v1586_v20 = vpack.c.bf16 %v588_v19, %v587_v18  ;;  %v1782_v19 = vld [vmem:[#allocation2 + $0x198] sm:$0xff] }
 0x217   :  { %v256_v22 = vmul.f32 %v250_v21, %v236_v14  ;;  %v254_v23 = vrot.slane %v250_v21, %v1737_v47  ;;  %v586_v14 = vld [vmem:[#allocation2 + $0x148] sm:$0xff] }
 0x218   :  { %v1583_v16 = vpack.c.bf16 %v586_v14, %v585_v13  ;;  %v1347_v21 = vld [vmem:[%s1864_s0 + $0x8] sm:$0xff]  ;;  %s1679_s0 = smov 32  }
 0x219   :  { %v258_v24 = vrot.slane %v256_v22, 7  ;;  %v255_v27 = vmul.f32 %v254_v23, %v225_v60  ;;  %v503_v22 = vld [vmem:[#allocation2 + $0x80] sm:$0xff]  ;;  %v504_v23 = vld [vmem:[#allocation2 + $0x88] sm:$0xff] }
 0x21b   :  { %v260_v26 = vsub.f32 %v1733_v44, %v258_v24  ;;  %v1577_v24 = vpack.c.bf16 %v504_v23, %v503_v22  ;;  %v497_v22 = vsub.s32 0, %v1725_v38 }
 0x21d   :  { %v264_v28 = vrot.slane %v260_v26, %v263_v25  ;;  %v506_v26 = vld [vmem:[#allocation2 + $0x98] sm:$0xff] }
 0x21f   :  { %v265_v29 = vadd.f32 %v264_v28, %v255_v27 }
 0x221   :  { %v266_v30 = vmul.f32 0.01, %v265_v29 }
 0x223   :  { %v267_v31 = vmax.f32 %v265_v29, %v266_v30 }
 0x225   :  { %1451 = vmatmul.mubr.msk.f32.vlgmr.msra.gmra.mrb[2].mxu0 %vm37_vm1, %v267_v31 }
 0x226   :  { %1472 = vmatprep.mubr.msk.f32.mxu0 %vm1677_vm0, %v1678_v1  ;;  %1578 = vmatpush3.bf16.msra.mxu0 %v1577_v24 }
 0x227   :  { %1579 = vmatprep.subr.bf16.mxu0 %v1676_v0 }
 0x2f8   :  { %v342_v40 = vpop.f32.mrb[2].mxu0 }
 0x2f9   :  { %v346_v41 = vsel %vm37_vm1, %v342_v40, 0.0  ;;  %v354_v43 = vmul.f32 %v342_v40, %v342_v40  ;;  %v1452_v45 = vpop.f32.mrb[3].mxu0 }
 0x2fa   :  { %v347_v46 = vrot.slane %v346_v41, 4 }
 0x2fb   :  { %v355_v48 = vsel %vm37_vm1, %v354_v43, 0.0 }
 0x2fc   :  { %v348_v49 = vadd.f32 %v347_v46, %v346_v41  ;;  %v356_v50 = vrot.slane %v355_v48, 4 }
 0x2fe   :  { %v349_v51 = vrot.slane %v348_v49, 2  ;;  %v357_v52 = vadd.f32 %v356_v50, %v355_v48 }
 0x300   :  { %v350_v53 = vadd.f32 %v349_v51, %v348_v49  ;;  %v358_v54 = vrot.slane %v357_v52, 2 }
 0x302   :  { %v351_v55 = vrot.slane %v350_v53, 1  ;;  %v359_v56 = vadd.f32 %v358_v54, %v357_v52 }
 0x304   :  { %v352_v57 = vadd.f32 %v351_v55, %v350_v53  ;;  %v360_v58 = vrot.slane %v359_v56, 1 }
 0x306   :  { %v353_v59 = vmul.f32 0.125, %v352_v57  ;;  %v361_v60 = vadd.f32 %v360_v58, %v359_v56 }
 0x308   :  { %v362_v61 = vmul.f32 0.125, %v361_v60  ;;  %v363_v62 = vmul.f32 %v353_v59, %v353_v59 }
 0x30a   :  { %v364_v63 = vsub.f32 %v362_v61, %v363_v62 }
 0x30c   :  { %v365_v2 = vadd.f32 1e-05, %v364_v63 }
 0x30e   :  { %1635 = vrsqrt.f32 %v365_v2 }
 0x318   :  { %v1636_v3 = vpop.eup %1635 }
 0x319   :  { %v367_v4 = vmul.f32 %v1636_v3, %v1727_v39 }
 0x31b   :  { %v373_v5 = vmul.f32 %v367_v4, %v353_v59  ;;  %v371_v6 = vrot.slane %v367_v4, %v263_v25  ;;  %v505_v25 = vld [vmem:[#allocation2 + $0x90] sm:$0xff] }
 0x31c   :  { %v1580_v27 = vpack.c.bf16 %v506_v26, %v505_v25 }
 0x31d   :  { %v375_v7 = vrot.slane %v373_v5, 7  ;;  %v372_v10 = vmul.f32 %v371_v6, %v342_v40 }
 0x31e   :  { %1581 = vmatpush3.bf16.msra.mxu0 %v1580_v27 }
 0x31f   :  { %v377_v9 = vsub.f32 %v1733_v44, %v375_v7  ;;  %1588 = vmatprep.subr.bf16.mxu0 %v1676_v0 }
 0x321   :  { %v381_v11 = vrot.slane %v377_v9, %v380_v8 }
 0x323   :  { %v382_v12 = vadd.f32 %v381_v11, %v372_v10 }
 0x325   :  { %v383_v15 = vmul.f32 0.01, %v382_v12 }
 0x327   :  { %v384_v17 = vmax.f32 %v382_v12, %v383_v15 }
 0x329   :  { %1462 = vmatmul.mubr.msk.f32.vlgmr.msra.gmra.mrb[2].mxu1 %vm37_vm1, %v384_v17 }
 0x32a   :  { %1584 = vmatpush3.bf16.msra.mxu1 %v1583_v16  ;;  %1483 = vmatprep.mubr.msk.f32.mxu1 %vm1677_vm0, %v1678_v1 }
 0x32b   :  { %1585 = vmatprep.subr.bf16.mxu1 %v1676_v0 }
 0x32e   :  { %1587 = vmatpush3.bf16.msra.mxu1 %v1586_v20 }
 0x32f   :  { %1594 = vmatprep.subr.bf16.mxu1 %v1676_v0 }
 0x331   :  { %1484 = vmatmul.mubr.msk.f32.vlgmr.msra.gmra.mrb[4].mxu1 %vm37_vm1, %v1347_v21 }
 0x332   :  { %1505 = vmatprep.mubr.msk.f32.mxu1 %vm1677_vm0, %v1678_v1 }
 0x3fc   :  { %v459_v28 = vpop.f32.mrb[2].mxu1 }
 0x3fd   :  { %v463_v29 = vsel %vm37_vm1, %v459_v28, 0.0  ;;  %v471_v30 = vmul.f32 %v459_v28, %v459_v28  ;;  %v1463_v31 = vpop.f32.mrb[3].mxu1 }
 0x3fe   :  { %v464_v32 = vrot.slane %v463_v29, 4  ;;  %v702_v31 = vld [vmem:[#allocation2 + $0x160] sm:$0xff] }
 0x3ff   :  { %v472_v33 = vsel %vm37_vm1, %v471_v30, 0.0 }
 0x400   :  { %v465_v34 = vadd.f32 %v464_v32, %v463_v29  ;;  %v473_v35 = vrot.slane %v472_v33, 4  ;;  %v703_v32 = vld [vmem:[#allocation2 + $0x168] sm:$0xff] }
 0x402   :  { %v466_v36 = vrot.slane %v465_v34, 2  ;;  %v474_v37 = vadd.f32 %v473_v35, %v472_v33  ;;  %v1589_v35 = vpack.c.bf16 %v703_v32, %v702_v31 }
 0x404   :  { %v467_v40 = vadd.f32 %v466_v36, %v465_v34  ;;  %v475_v41 = vrot.slane %v474_v37, 2  ;;  %v658_v43 = vpop.f32.mrb[4].mxu1 }
 0x405   :  { %v662_v45 = vsel %vm37_vm1, %v658_v43, 0.0  ;;  %v670_v46 = vmul.f32 %v658_v43, %v658_v43  ;;  %v1485_v48 = vpop.f32.mrb[5].mxu1 }
 0x406   :  { %v468_v49 = vrot.slane %v467_v40, 1  ;;  %v476_v50 = vadd.f32 %v475_v41, %v474_v37  ;;  %v663_v51 = vrot.slane %v662_v45, 4  ;;  %v705_v41 = vld [vmem:[#allocation2 + $0x178] sm:$0xff] }
 0x407   :  { %v671_v52 = vsel %vm37_vm1, %v670_v46, 0.0 }
 0x408   :  { %v469_v53 = vadd.f32 %v468_v49, %v467_v40  ;;  %v477_v54 = vrot.slane %v476_v50, 1  ;;  %v664_v55 = vadd.f32 %v663_v51, %v662_v45  ;;  %v672_v56 = vrot.slane %v671_v52, 4  ;;  %v704_v40 = vld [vmem:[#allocation2 + $0x170] sm:$0xff] }
 0x409   :  { %v1592_v46 = vpack.c.bf16 %v705_v41, %v704_v40 }
 0x40a   :  { %v470_v57 = vmul.f32 0.125, %v469_v53  ;;  %v478_v58 = vadd.f32 %v477_v54, %v476_v50  ;;  %v665_v59 = vrot.slane %v664_v55, 2  ;;  %v673_v60 = vadd.f32 %v672_v56, %v671_v52  ;;  %v787_v52 = vld [vmem:[#allocation2 + $0xb0] sm:$0xff]  ;;  %v788_v53 = vld [vmem:[#allocation2 + $0xb8] sm:$0xff] }
 0x40b   :  { %v1598_v54 = vpack.c.bf16 %v788_v53, %v787_v52  ;;  %v1021_v52 = vld [vmem:[#allocation2 + $0xf0] sm:$0xff]  ;;  %v1022_v53 = vld [vmem:[#allocation2 + $0xf8] sm:$0xff] }
 0x40c   :  { %v479_v61 = vmul.f32 0.125, %v478_v58  ;;  %v480_v62 = vmul.f32 %v470_v57, %v470_v57  ;;  %v666_v63 = vadd.f32 %v665_v59, %v664_v55  ;;  %v674_v2 = vrot.slane %v673_v60, 2  ;;  %v26_v58 = vld [vmem:[#allocation2 + $0x180] sm:$0xff] }
 0x40d   :  { %v510_v59 = vrot.slane %v26_v58, %v1731_v42 }
 0x40e   :  { %v481_v3 = vsub.f32 %v479_v61, %v480_v62  ;;  %v667_v4 = vrot.slane %v666_v63, 1  ;;  %v675_v5 = vadd.f32 %v674_v2, %v673_v60 }
 0x410   :  { %v482_v6 = vadd.f32 1e-05, %v481_v3  ;;  %v668_v7 = vadd.f32 %v667_v4, %v666_v63  ;;  %v676_v9 = vrot.slane %v675_v5, 1  ;;  %v902_v4 = vld [vmem:[#allocation2 + $0xc0] sm:$0xff] }
 0x412   :  { %1637 = vrsqrt.f32 %v482_v6  ;;  %v669_v10 = vmul.f32 0.125, %v668_v7  ;;  %v677_v11 = vadd.f32 %v676_v9, %v675_v5  ;;  %v903_v5 = vld [vmem:[#allocation2 + $0xc8] sm:$0xff]  ;;  %v904_v7 = vld [vmem:[#allocation2 + $0xd0] sm:$0xff]  ;;  %v905_v9 = vld [vmem:[#allocation2 + $0xd8] sm:$0xff] }
 0x413   :  { %v1601_v6 = vpack.c.bf16 %v903_v5, %v902_v4 }
 0x414   :  { %v678_v12 = vmul.f32 0.125, %v677_v11  ;;  %v679_v13 = vmul.f32 %v669_v10, %v669_v10 }
 0x416   :  { %v680_v14 = vsub.f32 %v678_v12, %v679_v13 }
 0x418   :  { %v681_v15 = vadd.f32 1e-05, %v680_v14 }
 0x41a   :  { %1639 = vrsqrt.f32 %v681_v15 }
 0x41c   :  { %v1638_v16 = vpop.eup %1637 }
 0x41d   :  { %v484_v17 = vmul.f32 %v1638_v16, %v1727_v39 }
 0x41f   :  { %v490_v18 = vmul.f32 %v484_v17, %v470_v57  ;;  %v488_v20 = vrot.slane %v484_v17, %v380_v8  ;;  %v1805_v57 = vsub.s32 3, %v1725_v38 }
 0x421   :  { %v492_v21 = vrot.slane %v490_v18, 7  ;;  %v489_v25 = vmul.f32 %v488_v20, %v459_v28  ;;  %v709_v60 = vrot.slane %v1727_v39, %v1805_v57 }
 0x423   :  { %v494_v23 = vsub.f32 %v1782_v19, %v492_v21 }
 0x424   :  { %v1640_v24 = vpop.eup %1639 }
 0x425   :  { %v498_v26 = vrot.slane %v494_v23, %v497_v22  ;;  %v683_v27 = vmul.f32 %v1640_v24, %v1733_v44 }
 0x427   :  { %v499_v29 = vadd.f32 %v498_v26, %v489_v25  ;;  %v689_v30 = vmul.f32 %v683_v27, %v669_v10  ;;  %v687_v34 = vrot.slane %v683_v27, %v1731_v42  ;;  %v1604_v10 = vpack.c.bf16 %v905_v9, %v904_v7 }
 0x429   :  { %v500_v33 = vmul.f32 0.01, %v499_v29  ;;  %v691_v8 = vrot.slane %v689_v30, 7  ;;  %v688_v28 = vmul.f32 %v687_v34, %v658_v43  ;;  %v786_v43 = vld [vmem:[#allocation2 + $0xa8] sm:$0xff] }
 0x42b   :  { %v501_v36 = vmax.f32 %v499_v29, %v500_v33  ;;  %v693_v37 = vsub.f32 %v1782_v19, %v691_v8 }
 0x42d   :  { %v697_v45 = vrot.slane %v693_v37, %v1737_v47  ;;  %1473 = vmatmul.mubr.msk.f32.vlgmr.msra.gmra.mrb[4].mxu0 %vm37_vm1, %v501_v36  ;;  %v785_v47 = vld [vmem:[#allocation2 + $0xa0] sm:$0xff] }
 0x42e   :  { %1590 = vmatpush3.bf16.msra.mxu0 %v1589_v35  ;;  %1494 = vmatprep.mubr.msk.f32.mxu0 %vm1677_vm0, %v1678_v1  ;;  %v1595_v51 = vpack.c.bf16 %v786_v43, %v785_v47  ;;  %v1019_v43 = vld [vmem:[#allocation2 + $0xe0] sm:$0xff] }
 0x42f   :  { %v698_v48 = vadd.f32 %v697_v45, %v688_v28  ;;  %1591 = vmatprep.subr.bf16.mxu0 %v1676_v0  ;;  %v1824_v28 = vsub.s32 1, %v1725_v38 }
 0x430   :  { %1596 = vmatpush3.bf16.msra.mxu1 %v1595_v51  ;;  %v1020_v51 = vld [vmem:[#allocation2 + $0xe8] sm:$0xff] }
 0x431   :  { %v699_v49 = vmul.f32 0.01, %v698_v48  ;;  %1597 = vmatprep.subr.bf16.mxu1 %v1676_v0 }
 0x432   :  { %1593 = vmatpush3.bf16.msra.mxu0 %v1592_v46 }
 0x433   :  { %v700_v50 = vmax.f32 %v698_v48, %v699_v49  ;;  %1600 = vmatprep.subr.bf16.mxu0 %v1676_v0 }
 0x434   :  { %1599 = vmatpush3.bf16.msra.mxu1 %v1598_v54  ;;  %v1610_v54 = vpack.c.bf16 %v1022_v53, %v1021_v52 }
 0x435   :  { %1495 = vmatmul.mubr.msk.f32.vlgmr.msra.gmra.mrb[6].mxu0 %vm37_vm1, %v700_v50  ;;  %1606 = vmatprep.subr.bf16.mxu1 %v1676_v0 }
 0x436   :  { %1516 = vmatprep.mubr.msk.f32.mxu0 %vm1677_vm0, %v1678_v1  ;;  %1602 = vmatpush3.bf16.msra.mxu0 %v1601_v6 }
 0x437   :  { %1603 = vmatprep.subr.bf16.mxu0 %v1676_v0 }
 0x43a   :  { %1605 = vmatpush3.bf16.msra.mxu0 %v1604_v10 }
 0x43b   :  { %1612 = vmatprep.subr.bf16.mxu0 %v1676_v0 }
 0x500   :  { %v580_v55 = vpop.f32.mrb[4].mxu0 }
 0x501   :  { %v1474_v56 = vpop.f32.mrb[5].mxu0  ;;  %v1810_v62 = vadd.f32 %v580_v55, %v510_v59 }
 0x508   :  { %v779_v61 = vpop.f32.mrb[6].mxu0 }
 0x509   :  { %v780_v63 = vadd.f32 %v779_v61, %v709_v60  ;;  %v1496_v2 = vpop.f32.mrb[7].mxu0 }
 0x50b   :  { %v783_v3 = vadd.f32 %v780_v63, %v1810_v62 }
 0x50d   :  { %1506 = vmatmul.mubr.msk.f32.vlgmr.msra.gmra.mrb[6].mxu1 %vm37_vm1, %v783_v3 }
 0x50e   :  { %1527 = vmatprep.mubr.msk.f32.mxu1 %vm1677_vm0, %v1678_v1 }
 0x5e0   :  { %v858_v11 = vpop.f32.mrb[6].mxu1 }
 0x5e1   :  { %v862_v12 = vsel %vm37_vm1, %v858_v11, 0.0  ;;  %v870_v13 = vmul.f32 %v858_v11, %v858_v11  ;;  %v1507_v14 = vpop.f32.mrb[7].mxu1 }
 0x5e2   :  { %v863_v15 = vrot.slane %v862_v12, 4 }
 0x5e3   :  { %v871_v16 = vsel %vm37_vm1, %v870_v13, 0.0 }
 0x5e4   :  { %v864_v17 = vadd.f32 %v863_v15, %v862_v12  ;;  %v872_v18 = vrot.slane %v871_v16, 4 }
 0x5e6   :  { %v865_v20 = vrot.slane %v864_v17, 2  ;;  %v873_v21 = vadd.f32 %v872_v18, %v871_v16 }
 0x5e8   :  { %v866_v23 = vadd.f32 %v865_v20, %v864_v17  ;;  %v874_v24 = vrot.slane %v873_v21, 2 }
 0x5ea   :  { %v867_v25 = vrot.slane %v866_v23, 1  ;;  %v875_v26 = vadd.f32 %v874_v24, %v873_v21 }
 0x5ec   :  { %v868_v27 = vadd.f32 %v867_v25, %v866_v23  ;;  %v876_v29 = vrot.slane %v875_v26, 1  ;;  %v1013_v25 = vsub.s32 2, %v1725_v38  ;;  %v1139_v38 = vld [vmem:[#allocation2 + $0x118] sm:$0xff] }
 0x5ee   :  { %v869_v30 = vmul.f32 0.125, %v868_v27  ;;  %v877_v31 = vadd.f32 %v876_v29, %v875_v26 }
 0x5f0   :  { %v878_v32 = vmul.f32 0.125, %v877_v31  ;;  %v879_v33 = vmul.f32 %v869_v30, %v869_v30 }
 0x5f2   :  { %v880_v34 = vsub.f32 %v878_v32, %v879_v33  ;;  %v1136_v33 = vld [vmem:[#allocation2 + $0x100] sm:$0xff] }
 0x5f4   :  { %v881_v8 = vadd.f32 1e-05, %v880_v34  ;;  %v1137_v34 = vld [vmem:[#allocation2 + $0x108] sm:$0xff] }
 0x5f6   :  { %1641 = vrsqrt.f32 %v881_v8  ;;  %v1613_v8 = vpack.c.bf16 %v1137_v34, %v1136_v33 }
 0x600   :  { %v1642_v35 = vpop.eup %1641 }
 0x601   :  { %v883_v36 = vmul.f32 %v1642_v35, %v1733_v44  ;;  %v1138_v35 = vld [vmem:[#allocation2 + $0x110] sm:$0xff] }
 0x603   :  { %v889_v37 = vmul.f32 %v883_v36, %v869_v30  ;;  %v887_v40 = vrot.slane %v883_v36, %v497_v22  ;;  %v1607_v22 = vpack.c.bf16 %v1020_v51, %v1019_v43  ;;  %v1616_v36 = vpack.c.bf16 %v1139_v38, %v1138_v35 }
 0x605   :  { %v891_v41 = vrot.slane %v889_v37, 7  ;;  %v888_v46 = vmul.f32 %v887_v40, %v858_v11  ;;  %1608 = vmatpush3.bf16.msra.mxu1 %v1607_v22 }
 0x606   :  { %1609 = vmatprep.subr.bf16.mxu1 %v1676_v0 }
 0x607   :  { %v893_v45 = vsub.f32 %v1782_v19, %v891_v41 }
 0x609   :  { %v897_v48 = vrot.slane %v893_v45, %v1824_v28  ;;  %1611 = vmatpush3.bf16.msra.mxu1 %v1610_v54 }
 0x60a   :  { %1618 = vmatprep.subr.bf16.mxu1 %v1676_v0 }
 0x60b   :  { %v898_v49 = vadd.f32 %v897_v48, %v888_v46 }
 0x60d   :  { %v899_v50 = vmul.f32 0.01, %v898_v49 }
 0x60f   :  { %v900_v47 = vmax.f32 %v898_v49, %v899_v50 }
 0x611   :  { %1517 = vmatmul.mubr.msk.f32.vlgmr.msra.gmra.mrb[8].mxu0 %vm37_vm1, %v900_v47 }
 0x612   :  { %1538 = vmatprep.mubr.msk.f32.mxu0 %vm1677_vm0, %v1678_v1  ;;  %1614 = vmatpush3.bf16.msra.mxu0 %v1613_v8 }
 0x613   :  { %1615 = vmatprep.subr.bf16.mxu0 %v1676_v0 }
 0x616   :  { %1617 = vmatpush3.bf16.msra.mxu0 %v1616_v36 }
 0x6e4   :  { %v975_v55 = vpop.f32.mrb[8].mxu0 }
 0x6e5   :  { %v979_v56 = vsel %vm37_vm1, %v975_v55, 0.0  ;;  %v987_v58 = vmul.f32 %v975_v55, %v975_v55  ;;  %v1518_v59 = vpop.f32.mrb[9].mxu0 }
 0x6e6   :  { %v980_v60 = vrot.slane %v979_v56, 4 }
 0x6e7   :  { %v988_v61 = vsel %vm37_vm1, %v987_v58, 0.0 }
 0x6e8   :  { %v981_v63 = vadd.f32 %v980_v60, %v979_v56  ;;  %v989_v2 = vrot.slane %v988_v61, 4 }
 0x6ea   :  { %v982_v3 = vrot.slane %v981_v63, 2  ;;  %v990_v4 = vadd.f32 %v989_v2, %v988_v61 }
 0x6ec   :  { %v983_v5 = vadd.f32 %v982_v3, %v981_v63  ;;  %v991_v6 = vrot.slane %v990_v4, 2 }
 0x6ee   :  { %v984_v7 = vrot.slane %v983_v5, 1  ;;  %v992_v9 = vadd.f32 %v991_v6, %v990_v4 }
 0x6f0   :  { %v985_v10 = vadd.f32 %v984_v7, %v983_v5  ;;  %v993_v11 = vrot.slane %v992_v9, 1 }
 0x6f2   :  { %v986_v12 = vmul.f32 0.125, %v985_v10  ;;  %v994_v13 = vadd.f32 %v993_v11, %v992_v9 }
 0x6f4   :  { %v995_v14 = vmul.f32 0.125, %v994_v13  ;;  %v996_v15 = vmul.f32 %v986_v12, %v986_v12  ;;  %v1253_v13 = vld [vmem:[#allocation2 + $0x120] sm:$0xff] }
 0x6f6   :  { %v997_v16 = vsub.f32 %v995_v14, %v996_v15  ;;  %v1254_v14 = vld [vmem:[#allocation2 + $0x128] sm:$0xff] }
 0x6f7   :  { %v1619_v15 = vpack.c.bf16 %v1254_v14, %v1253_v13 }
 0x6f8   :  { %v998_v17 = vadd.f32 1e-05, %v997_v16  ;;  %v1255_v16 = vld [vmem:[#allocation2 + $0x130] sm:$0xff] }
 0x6fa   :  { %1643 = vrsqrt.f32 %v998_v17  ;;  %v1256_v17 = vld [vmem:[#allocation2 + $0x138] sm:$0xff] }
 0x704   :  { %v1644_v18 = vpop.eup %1643 }
 0x705   :  { %v1000_v20 = vmul.f32 %v1644_v18, %v1733_v44  ;;  %v1622_v18 = vpack.c.bf16 %v1256_v17, %v1255_v16 }
 0x707   :  { %v1006_v21 = vmul.f32 %v1000_v20, %v986_v12  ;;  %v1004_v23 = vrot.slane %v1000_v20, %v1824_v28 }
 0x709   :  { %v1008_v24 = vrot.slane %v1006_v21, 7  ;;  %v1005_v27 = vmul.f32 %v1004_v23, %v975_v55 }
 0x70b   :  { %v1010_v26 = vsub.f32 %v1782_v19, %v1008_v24 }
 0x70d   :  { %v1014_v29 = vrot.slane %v1010_v26, %v1013_v25 }
 0x70f   :  { %v1015_v30 = vadd.f32 %v1014_v29, %v1005_v27 }
 0x711   :  { %v1016_v31 = vmul.f32 0.01, %v1015_v30 }
 0x713   :  { %v1017_v32 = vmax.f32 %v1015_v30, %v1016_v31 }
 0x715   :  { %1528 = vmatmul.mubr.msk.f32.vlgmr.msra.gmra.mrb[8].mxu1 %vm37_vm1, %v1017_v32 }
 0x716   :  { %1549 = vmatprep.mubr.msk.f32.mxu1 %vm1677_vm0, %v1678_v1  ;;  %1620 = vmatpush3.bf16.msra.mxu1 %v1619_v15 }
 0x717   :  { %1621 = vmatprep.subr.bf16.mxu1 %v1676_v0 }
 0x71a   :  { %1623 = vmatpush3.bf16.msra.mxu1 %v1622_v18 }
 0x7e8   :  { %v1092_v37 = vpop.f32.mrb[8].mxu1 }
 0x7e9   :  { %v1096_v40 = vsel %vm37_vm1, %v1092_v37, 0.0  ;;  %v1104_v41 = vmul.f32 %v1092_v37, %v1092_v37  ;;  %v1529_v45 = vpop.f32.mrb[9].mxu1 }
 0x7ea   :  { %v1097_v46 = vrot.slane %v1096_v40, 4 }
 0x7eb   :  { %v1105_v48 = vsel %vm37_vm1, %v1104_v41, 0.0 }
 0x7ec   :  { %v1098_v49 = vadd.f32 %v1097_v46, %v1096_v40  ;;  %v1106_v1 = vrot.slane %v1105_v48, 4 }
 0x7ee   :  { %v1099_v50 = vrot.slane %v1098_v49, 2  ;;  %v1107_v47 = vadd.f32 %v1106_v1, %v1105_v48 }
 0x7f0   :  { %v1100_v43 = vadd.f32 %v1099_v50, %v1098_v49  ;;  %v1108_v51 = vrot.slane %v1107_v47, 2 }
 0x7f2   :  { %v1101_v22 = vrot.slane %v1100_v43, 1  ;;  %v1109_v52 = vadd.f32 %v1108_v51, %v1107_v47 }
 0x7f4   :  { %v1102_v53 = vadd.f32 %v1101_v22, %v1100_v43  ;;  %v1110_v54 = vrot.slane %v1109_v52, 1 }
 0x7f6   :  { %v1103_v55 = vmul.f32 0.125, %v1102_v53  ;;  %v1111_v56 = vadd.f32 %v1110_v54, %v1109_v52  ;;  %v1260_v54 = vrot.slane %v1727_v39, %v1824_v28 }
 0x7f8   :  { %v1112_v58 = vmul.f32 0.125, %v1111_v56  ;;  %v1113_v59 = vmul.f32 %v1103_v55, %v1103_v55 }
 0x7fa   :  { %v1114_v60 = vsub.f32 %v1112_v58, %v1113_v59 }
 0x7fc   :  { %v1115_v61 = vadd.f32 1e-05, %v1114_v60 }
 0x7fe   :  { %1645 = vrsqrt.f32 %v1115_v61 }
 0x808   :  { %v1646_v63 = vpop.eup %1645 }
 0x809   :  { %v1117_v2 = vmul.f32 %v1646_v63, %v1733_v44 }
 0x80b   :  { %v1123_v3 = vmul.f32 %v1117_v2, %v1103_v55  ;;  %v1121_v4 = vrot.slane %v1117_v2, %v1013_v25 }
 0x80d   :  { %v1125_v5 = vrot.slane %v1123_v3, 7  ;;  %v1122_v7 = vmul.f32 %v1121_v4, %v1092_v37 }
 0x80f   :  { %v1127_v6 = vsub.f32 %v1782_v19, %v1125_v5 }
 0x811   :  { %v1131_v9 = vrot.slane %v1127_v6, %v1805_v57 }
 0x813   :  { %v1132_v10 = vadd.f32 %v1131_v9, %v1122_v7 }
 0x815   :  { %v1133_v11 = vmul.f32 0.01, %v1132_v10 }
 0x817   :  { %v1134_v12 = vmax.f32 %v1132_v10, %v1133_v11 }
 0x819   :  { %1539 = vmatmul.mubr.msk.f32.vlgmr.msra.gmra.mrb[10].mxu0 %vm37_vm1, %v1134_v12 }
 0x8ec   :  { %v1209_v20 = vpop.f32.mrb[10].mxu0 }
 0x8ed   :  { %v1213_v21 = vsel %vm37_vm1, %v1209_v20, 0.0  ;;  %v1221_v23 = vmul.f32 %v1209_v20, %v1209_v20  ;;  %v1540_v24 = vpop.f32.mrb[11].mxu0 }
 0x8ee   :  { %v1214_v25 = vrot.slane %v1213_v21, 4 }
 0x8ef   :  { %v1222_v26 = vsel %vm37_vm1, %v1221_v23, 0.0 }
 0x8f0   :  { %v1215_v27 = vadd.f32 %v1214_v25, %v1213_v21  ;;  %v1223_v29 = vrot.slane %v1222_v26, 4 }
 0x8f2   :  { %v1216_v30 = vrot.slane %v1215_v27, 2  ;;  %v1224_v31 = vadd.f32 %v1223_v29, %v1222_v26 }
 0x8f4   :  { %v1217_v32 = vadd.f32 %v1216_v30, %v1215_v27  ;;  %v1225_v33 = vrot.slane %v1224_v31, 2 }
 0x8f6   :  { %v1218_v34 = vrot.slane %v1217_v32, 1  ;;  %v1226_v0 = vadd.f32 %v1225_v33, %v1224_v31 }
 0x8f8   :  { %v1219_v8 = vadd.f32 %v1218_v34, %v1217_v32  ;;  %v1227_v35 = vrot.slane %v1226_v0, 1 }
 0x8fa   :  { %v1220_v38 = vmul.f32 0.125, %v1219_v8  ;;  %v1228_v36 = vadd.f32 %v1227_v35, %v1226_v0 }
 0x8fc   :  { %v1229_v37 = vmul.f32 0.125, %v1228_v36  ;;  %v1230_v40 = vmul.f32 %v1220_v38, %v1220_v38 }
 0x8fe   :  { %v1231_v41 = vsub.f32 %v1229_v37, %v1230_v40 }
 0x900   :  { %v1232_v45 = vadd.f32 1e-05, %v1231_v41 }
 0x902   :  { %1647 = vrsqrt.f32 %v1232_v45 }
 0x90c   :  { %v1648_v46 = vpop.eup %1647 }
 0x90d   :  { %v1234_v48 = vmul.f32 %v1648_v46, %v1733_v44 }
 0x90f   :  { %v1240_v49 = vmul.f32 %v1234_v48, %v1220_v38  ;;  %v1238_v1 = vrot.slane %v1234_v48, %v1805_v57 }
 0x911   :  { %v1242_v50 = vrot.slane %v1240_v49, 7  ;;  %v1239_v43 = vmul.f32 %v1238_v1, %v1209_v20 }
 0x913   :  { %v1244_v47 = vsub.f32 %v1782_v19, %v1242_v50 }
 0x915   :  { %v1248_v51 = vrot.slane %v1244_v47, %v1731_v42 }
 0x917   :  { %v1249_v22 = vadd.f32 %v1248_v51, %v1239_v43 }
 0x919   :  { %v1250_v52 = vmul.f32 0.01, %v1249_v22 }
 0x91b   :  { %v1251_v53 = vmax.f32 %v1249_v22, %v1250_v52 }
 0x91d   :  { %1550 = vmatmul.mubr.msk.f32.vlgmr.msra.gmra.mrb[10].mxu1 %vm37_vm1, %v1251_v53 }
 0x9f0   :  { %v1330_v55 = vpop.f32.mrb[10].mxu1 }
 0x9f1   :  { %v1331_v56 = vadd.f32 %v1330_v55, %v1260_v54  ;;  %v1551_v44 = vpop.f32.mrb[11].mxu1 }
 0x9f3   :  { %1335 = vrot.lane.b32.xlu0 %v1331_v56, %s1679_s0 }
 0xa65   :  { %v1336_v57 = vpop.permute.xlu0 %1335 }
 0xa66   :  { %v1338_v19 = vsel %vm37_vm1, %v1810_v62, %v1336_v57 }
 0xa67   :  { %v1340_v58 = vsel %vm1339_vm2, %v1338_v19, 0.0 }
 0xa68   :  { %1341 = vst [vmem:[%s1866_s2] sm:$0xff] %v1340_v58 }
 0xa69   :  { %1346 = vsyncpa [#allocation3], 1 }

</bundles_post_ra>
